<compile_context>
chip_gen: v5e
topology: v5e:2x2
jax: 0.10.0
libtpu: 0.0.40
codegen_flags: <defaults>
</compile_context>

<pallas_src>
import math
import jax
import jax.numpy as jnp
from jax.experimental import pallas as pl
from jax.experimental.pallas import tpu as pltpu

# ---------------- problem sizes (small, consistent with the module) ----------------
B = 2        # batch
N = 16       # node_n
D = 32       # input_dim
F = 128      # filters
K = 9        # temporal conv kernel size
PAD = (K - 1) // 2
EPS = 1e-5


# ---------------------------------- Pallas kernel ----------------------------------
def gtc_kernel(x_ref, a_ref, w_ref, scale_ref, shift_ref, cw_ref, out_ref):
    # x_ref    : (N, D)      one batch instance (leading batch dim squeezed)
    # a_ref    : (N, N)      adjacency (shared across instances)
    # w_ref    : (D, F)      GraphConvolution weight
    # scale_ref: (N, 2)      folded BN scales: [:,0]=s1, [:,1]=s2
    # shift_ref: (2, N, F)   folded shifts: [0]=b*s1+t1, [1]=cb*s2+t2+b
    # cw_ref   : (K, F, F)   per-tap Conv1d weight, bfloat16
    # out_ref  : (N, F)

    # GraphConvolution (bias folded into shift tables): gc0 = A @ x @ W
    gc0 = jnp.dot(a_ref[...], x_ref[...], preferred_element_type=jnp.float32)   # (N, D)
    gc0 = jnp.dot(gc0, w_ref[...], preferred_element_type=jnp.float32)          # (N, F)

    sc = scale_ref[...]                       # (N, 2)
    s1 = sc[:, 0:1]                           # (N, 1) per-node BN1 scale
    s2 = sc[:, 1:2]                           # (N, 1) per-node BN2 scale

    # BatchNorm1d #1 (eval, folded, GC bias absorbed) + ReLU; dropout = identity.
    y = jnp.maximum(gc0 * s1 + shift_ref[0], 0.0)                               # (N, F)
    y16 = y.astype(jnp.bfloat16)              # cast BEFORE building the shifted taps

    # Conv1d('same', K=9) over the node axis: K statically-shifted bf16 matmuls,
    # accumulated in f32 (no wide im2col intermediate).
    zpad = jnp.zeros((PAD, F), jnp.bfloat16)
    ypad = jnp.concatenate([zpad, y16, zpad], axis=0)                           # (N+2P, F)
    acc = jnp.zeros((N, F), jnp.float32)
    for k in range(K):                        # static unroll, K = 9
        acc = acc + jnp.dot(ypad[k:k + N, :], cw_ref[k],
                            preferred_element_type=jnp.float32)                # (N, F)

    # BatchNorm1d #2 (eval, folded, conv + GC bias absorbed) + residual (pre-BN gc).
    out_ref[...] = (acc * s2 + shift_ref[1] + gc0).astype(out_ref.dtype)


def graph_temporal_convolution(x, A, W, scale, shift, cw):
    flops = B * 2 * (N * N * D + N * D * F + K * N * F * F)
    bytes_accessed = (x.size * 4 + A.size * 4 + W.size * 4 + scale.size * 4
                      + shift.size * 4 + cw.size * 2 + B * N * F * 4)
    return pl.pallas_call(
        gtc_kernel,
        out_shape=jax.ShapeDtypeStruct((B, N, F), jnp.float32),
        grid_spec=pltpu.PrefetchScalarGridSpec(
            num_scalar_prefetch=0,
            grid=(B,),
            in_specs=[
                pl.BlockSpec((None, N, D), lambda b: (b, 0, 0)),   # x (per instance)
                pl.BlockSpec((N, N), lambda b: (0, 0)),            # A (shared, resident)
                pl.BlockSpec((D, F), lambda b: (0, 0)),            # GC weight (resident)
                pl.BlockSpec((N, 2), lambda b: (0, 0)),            # BN scales (resident)
                pl.BlockSpec((2, N, F), lambda b: (0, 0, 0)),      # folded shifts (resident)
                pl.BlockSpec((K, F, F), lambda b: (0, 0, 0)),      # conv weight bf16 (resident)
            ],
            out_specs=pl.BlockSpec((None, N, F), lambda b: (b, 0, 0)),
        ),
        compiler_params=pltpu.CompilerParams(dimension_semantics=("parallel",)),
        cost_estimate=pl.CostEstimate(flops=flops, transcendentals=0,
                                      bytes_accessed=bytes_accessed),
    )(x, A, W, scale, shift, cw)


# -------------------------------- pure-JAX reference -------------------------------
def reference(x, A, W, bias, g1, b1, m1, v1, conv_w, conv_b, g2, b2, m2, v2):
    gc = jnp.matmul(A, x)                          # (B, N, D)
    gc = jnp.matmul(gc, W) + bias                  # (B, N, F)
    y = (gc - m1[None, :, None]) / jnp.sqrt(v1 + EPS)[None, :, None]
    y = y * g1[None, :, None] + b1[None, :, None]
    y = jnp.maximum(y, 0.0)
    y_t = jnp.transpose(y, (0, 2, 1))              # (B, F, N)  NCL
    conv = jax.lax.conv_general_dilated(
        y_t, conv_w, window_strides=(1,), padding="SAME",
        dimension_numbers=("NCH", "OIH", "NCH"))
    conv = conv + conv_b[None, :, None]
    y2 = jnp.transpose(conv, (0, 2, 1))            # (B, N, F)
    y2 = (y2 - m2[None, :, None]) / jnp.sqrt(v2 + EPS)[None, :, None]
    y2 = y2 * g2[None, :, None] + b2[None, :, None]
    return y2 + gc


# -------------------------------------- main ---------------------------------------
if __name__ == "__main__":
    key = jax.random.PRNGKey(0)
    keys = jax.random.split(key, 16)

    # inputs
    x = jax.random.normal(keys[0], (B, N, D), jnp.float32)
    A = jax.random.normal(keys[1], (N, N), jnp.float32) * 0.1

    # GraphConvolution params (uniform(-stdv, stdv), stdv = 1/sqrt(filters))
    stdv = 1.0 / math.sqrt(F)
    W = jax.random.uniform(keys[2], (D, F), jnp.float32, -stdv, stdv)
    bias = jax.random.uniform(keys[3], (F,), jnp.float32, -stdv, stdv)

    # BatchNorm1d(node_n) #1 params + running stats
    g1 = jax.random.uniform(keys[4], (N,), jnp.float32, 0.5, 1.5)
    b1 = jax.random.normal(keys[5], (N,), jnp.float32) * 0.1
    m1 = jax.random.normal(keys[6], (N,), jnp.float32) * 0.1
    v1 = jax.random.uniform(keys[7], (N,), jnp.float32, 0.5, 1.5)

    # Conv1d(filters, filters, kernel=9) params
    fan_in = F * K
    cstd = 1.0 / math.sqrt(fan_in)
    conv_w = jax.random.uniform(keys[8], (F, F, K), jnp.float32, -cstd, cstd)
    conv_b = jax.random.uniform(keys[9], (F,), jnp.float32, -cstd, cstd)

    # BatchNorm1d(node_n) #2 params + running stats
    g2 = jax.random.uniform(keys[10], (N,), jnp.float32, 0.5, 1.5)
    b2 = jax.random.normal(keys[11], (N,), jnp.float32) * 0.1
    m2 = jax.random.normal(keys[12], (N,), jnp.float32) * 0.1
    v2 = jax.random.uniform(keys[13], (N,), jnp.float32, 0.5, 1.5)

    # ---- glue (outside the kernel): fold BN / biases and pack parameters ----
    s1 = g1 / jnp.sqrt(v1 + EPS)
    t1 = b1 - m1 * s1
    s2 = g2 / jnp.sqrt(v2 + EPS)
    t2 = b2 - m2 * s2

    scale = jnp.stack([s1, s2], axis=1)                                  # (N, 2)
    shift = jnp.stack(
        [bias[None, :] * s1[:, None] + t1[:, None],                      # GC bias folded
         conv_b[None, :] * s2[:, None] + t2[:, None] + bias[None, :]],   # conv+GC bias folded
        axis=0)                                                          # (2, N, F)
    cw3 = jnp.transpose(conv_w, (2, 1, 0)).astype(jnp.bfloat16)          # (K, F_in, F_out)

    out = graph_temporal_convolution(x, A, W, scale, shift, cw3)
    out = jax.block_until_ready(out)

    ref = reference(x, A, W, bias, g1, b1, m1, v1, conv_w, conv_b, g2, b2, m2, v2)
    ref = jax.block_until_ready(ref)

    if jnp.allclose(out, ref, rtol=2e-3, atol=2e-3):
        print("KERNEL_OK")
    else:
        err = float(jnp.max(jnp.abs(out - ref)))
        print(f"KERNEL_MISMATCH max_abs_err={err}")
</pallas_src>

<mosaic_0001>
module attributes {stable_mosaic.version = 11 : i64} {
  func.func @gtc_kernel(%arg0: i32, %arg1: memref<1x16x32xf32, #tpu.memory_space<vmem>>, %arg2: memref<16x16xf32, #tpu.memory_space<vmem>>, %arg3: memref<32x128xf32, #tpu.memory_space<vmem>>, %arg4: memref<16x2xf32, #tpu.memory_space<vmem>>, %arg5: memref<2x16x128xf32, #tpu.memory_space<vmem>>, %arg6: memref<9x128x128xbf16, #tpu.memory_space<vmem>>, %arg7: memref<1x16x128xf32, #tpu.memory_space<vmem>>) attributes {dimension_semantics = [#tpu.dimension_semantics<parallel>], iteration_bounds = array<i64: 2>, scalar_prefetch = 0 : i64, scratch_operands = 0 : i64, tpu.core_type = #tpu.core_type<tc>, window_params = [{transform_indices = @transform_0, window_bounds = array<i64: 1, 16, 32>}, {pipeline_mode = #tpu.pipeline_mode<synchronous>, transform_indices = @transform_1, window_bounds = array<i64: 16, 16>}, {pipeline_mode = #tpu.pipeline_mode<synchronous>, transform_indices = @transform_2, window_bounds = array<i64: 32, 128>}, {pipeline_mode = #tpu.pipeline_mode<synchronous>, transform_indices = @transform_3, window_bounds = array<i64: 16, 2>}, {pipeline_mode = #tpu.pipeline_mode<synchronous>, transform_indices = @transform_4, window_bounds = array<i64: 2, 16, 128>}, {pipeline_mode = #tpu.pipeline_mode<synchronous>, transform_indices = @transform_5, window_bounds = array<i64: 9, 128, 128>}, {transform_indices = @transform_6, window_bounds = array<i64: 1, 16, 128>}]} {
    %c0 = arith.constant 0 : index
    %c0_0 = arith.constant 0 : index
    %0 = vector.load %arg2[%c0, %c0_0] : memref<16x16xf32, #tpu.memory_space<vmem>>, vector<16x16xf32>
    %c0_1 = arith.constant 0 : index
    %c0_2 = arith.constant 0 : index
    %c0_3 = arith.constant 0 : index
    %1 = vector.load %arg1[%c0_1, %c0_2, %c0_3] : memref<1x16x32xf32, #tpu.memory_space<vmem>>, vector<1x16x32xf32>
    %2 = vector.shape_cast %1 : vector<1x16x32xf32> to vector<16x32xf32>
    %cst = arith.constant dense<0.000000e+00> : vector<16x32xf32>
    %3 = tpu.matmul %0, %2, %cst {dimension_numbers = #tpu.dot_dimension_numbers<[1], [0], [0], [1], [0, 0, 1, 1], [], []>} : vector<16x16xf32>, vector<16x32xf32>, vector<16x32xf32> -> vector<16x32xf32>
    %c0_4 = arith.constant 0 : index
    %c0_5 = arith.constant 0 : index
    %4 = vector.load %arg3[%c0_4, %c0_5] : memref<32x128xf32, #tpu.memory_space<vmem>>, vector<32x128xf32>
    %cst_6 = arith.constant dense<0.000000e+00> : vector<16x128xf32>
    %5 = tpu.matmul %3, %4, %cst_6 {dimension_numbers = #tpu.dot_dimension_numbers<[1], [0], [0], [1], [0, 0, 1, 1], [], []>} : vector<16x32xf32>, vector<32x128xf32>, vector<16x128xf32> -> vector<16x128xf32>
    %c0_7 = arith.constant 0 : index
    %c0_8 = arith.constant 0 : index
    %6 = vector.load %arg4[%c0_7, %c0_8] : memref<16x2xf32, #tpu.memory_space<vmem>>, vector<16x2xf32>
    %7 = vector.extract_strided_slice %6 {offsets = [0, 0], sizes = [16, 1], strides = [1, 1]} : vector<16x2xf32> to vector<16x1xf32>
    %8 = vector.extract_strided_slice %6 {offsets = [0, 1], sizes = [16, 1], strides = [1, 1]} : vector<16x2xf32> to vector<16x1xf32>
    %9 = vector.broadcast %7 : vector<16x1xf32> to vector<16x128xf32>
    %10 = arith.mulf %5, %9 : vector<16x128xf32>
    %c0_9 = arith.constant 0 : index
    %c0_10 = arith.constant 0 : index
    %c0_11 = arith.constant 0 : index
    %11 = vector.load %arg5[%c0_9, %c0_10, %c0_11] : memref<2x16x128xf32, #tpu.memory_space<vmem>>, vector<1x16x128xf32>
    %12 = vector.shape_cast %11 : vector<1x16x128xf32> to vector<16x128xf32>
    %13 = arith.addf %10, %12 : vector<16x128xf32>
    %cst_12 = arith.constant 0.000000e+00 : f32
    %14 = vector.broadcast %cst_12 : f32 to vector<16x128xf32>
    %15 = arith.maximumf %13, %14 : vector<16x128xf32>
    %16 = arith.truncf %15 : vector<16x128xf32> to vector<16x128xbf16>
    %cst_13 = arith.constant 0.000000e+00 : bf16
    %17 = vector.broadcast %cst_13 : bf16 to vector<4x128xbf16>
    %18 = tpu.concatenate %17, %16, %17 in 0 : vector<4x128xbf16>, vector<16x128xbf16>, vector<4x128xbf16> -> vector<24x128xbf16>
    %cst_14 = arith.constant 0.000000e+00 : f32
    %19 = vector.broadcast %cst_14 : f32 to vector<16x128xf32>
    %20 = vector.extract_strided_slice %18 {offsets = [0, 0], sizes = [16, 128], strides = [1, 1]} : vector<24x128xbf16> to vector<16x128xbf16>
    %c0_15 = arith.constant 0 : index
    %c0_16 = arith.constant 0 : index
    %c0_17 = arith.constant 0 : index
    %21 = vector.load %arg6[%c0_15, %c0_16, %c0_17] : memref<9x128x128xbf16, #tpu.memory_space<vmem>>, vector<1x128x128xbf16>
    %22 = vector.shape_cast %21 : vector<1x128x128xbf16> to vector<128x128xbf16>
    %cst_18 = arith.constant dense<0.000000e+00> : vector<16x128xf32>
    %23 = tpu.matmul %20, %22, %cst_18 {dimension_numbers = #tpu.dot_dimension_numbers<[1], [0], [0], [1], [0, 0, 1, 1], [], []>} : vector<16x128xbf16>, vector<128x128xbf16>, vector<16x128xf32> -> vector<16x128xf32>
    %24 = arith.addf %19, %23 : vector<16x128xf32>
    %25 = vector.extract_strided_slice %18 {offsets = [1, 0], sizes = [16, 128], strides = [1, 1]} : vector<24x128xbf16> to vector<16x128xbf16>
    %c1 = arith.constant 1 : index
    %c0_19 = arith.constant 0 : index
    %c0_20 = arith.constant 0 : index
    %26 = vector.load %arg6[%c1, %c0_19, %c0_20] : memref<9x128x128xbf16, #tpu.memory_space<vmem>>, vector<1x128x128xbf16>
    %27 = vector.shape_cast %26 : vector<1x128x128xbf16> to vector<128x128xbf16>
    %cst_21 = arith.constant dense<0.000000e+00> : vector<16x128xf32>
    %28 = tpu.matmul %25, %27, %cst_21 {dimension_numbers = #tpu.dot_dimension_numbers<[1], [0], [0], [1], [0, 0, 1, 1], [], []>} : vector<16x128xbf16>, vector<128x128xbf16>, vector<16x128xf32> -> vector<16x128xf32>
    %29 = arith.addf %24, %28 : vector<16x128xf32>
    %30 = vector.extract_strided_slice %18 {offsets = [2, 0], sizes = [16, 128], strides = [1, 1]} : vector<24x128xbf16> to vector<16x128xbf16>
    %c2 = arith.constant 2 : index
    %c0_22 = arith.constant 0 : index
    %c0_23 = arith.constant 0 : index
    %31 = vector.load %arg6[%c2, %c0_22, %c0_23] : memref<9x128x128xbf16, #tpu.memory_space<vmem>>, vector<1x128x128xbf16>
    %32 = vector.shape_cast %31 : vector<1x128x128xbf16> to vector<128x128xbf16>
    %cst_24 = arith.constant dense<0.000000e+00> : vector<16x128xf32>
    %33 = tpu.matmul %30, %32, %cst_24 {dimension_numbers = #tpu.dot_dimension_numbers<[1], [0], [0], [1], [0, 0, 1, 1], [], []>} : vector<16x128xbf16>, vector<128x128xbf16>, vector<16x128xf32> -> vector<16x128xf32>
    %34 = arith.addf %29, %33 : vector<16x128xf32>
    %35 = vector.extract_strided_slice %18 {offsets = [3, 0], sizes = [16, 128], strides = [1, 1]} : vector<24x128xbf16> to vector<16x128xbf16>
    %c3 = arith.constant 3 : index
    %c0_25 = arith.constant 0 : index
    %c0_26 = arith.constant 0 : index
    %36 = vector.load %arg6[%c3, %c0_25, %c0_26] : memref<9x128x128xbf16, #tpu.memory_space<vmem>>, vector<1x128x128xbf16>
    %37 = vector.shape_cast %36 : vector<1x128x128xbf16> to vector<128x128xbf16>
    %cst_27 = arith.constant dense<0.000000e+00> : vector<16x128xf32>
    %38 = tpu.matmul %35, %37, %cst_27 {dimension_numbers = #tpu.dot_dimension_numbers<[1], [0], [0], [1], [0, 0, 1, 1], [], []>} : vector<16x128xbf16>, vector<128x128xbf16>, vector<16x128xf32> -> vector<16x128xf32>
    %39 = arith.addf %34, %38 : vector<16x128xf32>
    %40 = vector.extract_strided_slice %18 {offsets = [4, 0], sizes = [16, 128], strides = [1, 1]} : vector<24x128xbf16> to vector<16x128xbf16>
    %c4 = arith.constant 4 : index
    %c0_28 = arith.constant 0 : index
    %c0_29 = arith.constant 0 : index
    %41 = vector.load %arg6[%c4, %c0_28, %c0_29] : memref<9x128x128xbf16, #tpu.memory_space<vmem>>, vector<1x128x128xbf16>
    %42 = vector.shape_cast %41 : vector<1x128x128xbf16> to vector<128x128xbf16>
    %cst_30 = arith.constant dense<0.000000e+00> : vector<16x128xf32>
    %43 = tpu.matmul %40, %42, %cst_30 {dimension_numbers = #tpu.dot_dimension_numbers<[1], [0], [0], [1], [0, 0, 1, 1], [], []>} : vector<16x128xbf16>, vector<128x128xbf16>, vector<16x128xf32> -> vector<16x128xf32>
    %44 = arith.addf %39, %43 : vector<16x128xf32>
    %45 = vector.extract_strided_slice %18 {offsets = [5, 0], sizes = [16, 128], strides = [1, 1]} : vector<24x128xbf16> to vector<16x128xbf16>
    %c5 = arith.constant 5 : index
    %c0_31 = arith.constant 0 : index
    %c0_32 = arith.constant 0 : index
    %46 = vector.load %arg6[%c5, %c0_31, %c0_32] : memref<9x128x128xbf16, #tpu.memory_space<vmem>>, vector<1x128x128xbf16>
    %47 = vector.shape_cast %46 : vector<1x128x128xbf16> to vector<128x128xbf16>
    %cst_33 = arith.constant dense<0.000000e+00> : vector<16x128xf32>
    %48 = tpu.matmul %45, %47, %cst_33 {dimension_numbers = #tpu.dot_dimension_numbers<[1], [0], [0], [1], [0, 0, 1, 1], [], []>} : vector<16x128xbf16>, vector<128x128xbf16>, vector<16x128xf32> -> vector<16x128xf32>
    %49 = arith.addf %44, %48 : vector<16x128xf32>
    %50 = vector.extract_strided_slice %18 {offsets = [6, 0], sizes = [16, 128], strides = [1, 1]} : vector<24x128xbf16> to vector<16x128xbf16>
    %c6 = arith.constant 6 : index
    %c0_34 = arith.constant 0 : index
    %c0_35 = arith.constant 0 : index
    %51 = vector.load %arg6[%c6, %c0_34, %c0_35] : memref<9x128x128xbf16, #tpu.memory_space<vmem>>, vector<1x128x128xbf16>
    %52 = vector.shape_cast %51 : vector<1x128x128xbf16> to vector<128x128xbf16>
    %cst_36 = arith.constant dense<0.000000e+00> : vector<16x128xf32>
    %53 = tpu.matmul %50, %52, %cst_36 {dimension_numbers = #tpu.dot_dimension_numbers<[1], [0], [0], [1], [0, 0, 1, 1], [], []>} : vector<16x128xbf16>, vector<128x128xbf16>, vector<16x128xf32> -> vector<16x128xf32>
    %54 = arith.addf %49, %53 : vector<16x128xf32>
    %55 = vector.extract_strided_slice %18 {offsets = [7, 0], sizes = [16, 128], strides = [1, 1]} : vector<24x128xbf16> to vector<16x128xbf16>
    %c7 = arith.constant 7 : index
    %c0_37 = arith.constant 0 : index
    %c0_38 = arith.constant 0 : index
    %56 = vector.load %arg6[%c7, %c0_37, %c0_38] : memref<9x128x128xbf16, #tpu.memory_space<vmem>>, vector<1x128x128xbf16>
    %57 = vector.shape_cast %56 : vector<1x128x128xbf16> to vector<128x128xbf16>
    %cst_39 = arith.constant dense<0.000000e+00> : vector<16x128xf32>
    %58 = tpu.matmul %55, %57, %cst_39 {dimension_numbers = #tpu.dot_dimension_numbers<[1], [0], [0], [1], [0, 0, 1, 1], [], []>} : vector<16x128xbf16>, vector<128x128xbf16>, vector<16x128xf32> -> vector<16x128xf32>
    %59 = arith.addf %54, %58 : vector<16x128xf32>
    %60 = vector.extract_strided_slice %18 {offsets = [8, 0], sizes = [16, 128], strides = [1, 1]} : vector<24x128xbf16> to vector<16x128xbf16>
    %c8 = arith.constant 8 : index
    %c0_40 = arith.constant 0 : index
    %c0_41 = arith.constant 0 : index
    %61 = vector.load %arg6[%c8, %c0_40, %c0_41] : memref<9x128x128xbf16, #tpu.memory_space<vmem>>, vector<1x128x128xbf16>
    %62 = vector.shape_cast %61 : vector<1x128x128xbf16> to vector<128x128xbf16>
    %cst_42 = arith.constant dense<0.000000e+00> : vector<16x128xf32>
    %63 = tpu.matmul %60, %62, %cst_42 {dimension_numbers = #tpu.dot_dimension_numbers<[1], [0], [0], [1], [0, 0, 1, 1], [], []>} : vector<16x128xbf16>, vector<128x128xbf16>, vector<16x128xf32> -> vector<16x128xf32>
    %64 = arith.addf %59, %63 : vector<16x128xf32>
    %65 = vector.broadcast %8 : vector<16x1xf32> to vector<16x128xf32>
    %66 = arith.mulf %64, %65 : vector<16x128xf32>
    %c1_43 = arith.constant 1 : index
    %c0_44 = arith.constant 0 : index
    %c0_45 = arith.constant 0 : index
    %67 = vector.load %arg5[%c1_43, %c0_44, %c0_45] : memref<2x16x128xf32, #tpu.memory_space<vmem>>, vector<1x16x128xf32>
    %68 = vector.shape_cast %67 : vector<1x16x128xf32> to vector<16x128xf32>
    %69 = arith.addf %66, %68 : vector<16x128xf32>
    %70 = arith.addf %69, %5 : vector<16x128xf32>
    %c0_46 = arith.constant 0 : index
    %c0_47 = arith.constant 0 : index
    %c0_48 = arith.constant 0 : index
    %71 = vector.load %arg7[%c0_46, %c0_47, %c0_48] : memref<1x16x128xf32, #tpu.memory_space<vmem>>, vector<1x16x128xf32>
    %72 = vector.shape_cast %71 : vector<1x16x128xf32> to vector<16x128xf32>
    %73 = vector.shape_cast %70 : vector<16x128xf32> to vector<1x16x128xf32>
    tpu.vector_store %arg7[%c0_46, %c0_47, %c0_48], %73 {strides = array<i32>} : memref<1x16x128xf32, #tpu.memory_space<vmem>>, vector<1x16x128xf32>,
    return
  }
  func.func @transform_0(%arg0: i32) -> (i32, i32, i32) {
    %c0_i32 = arith.constant 0 : i32
    %c0_i32_0 = arith.constant 0 : i32
    %c0_i32_1 = arith.constant 0 : i32
    return %arg0, %c0_i32, %c0_i32_0 : i32, i32, i32
  }
  func.func @transform_1(%arg0: i32) -> (i32, i32) {
    %c0_i32 = arith.constant 0 : i32
    %c0_i32_0 = arith.constant 0 : i32
    %c0_i32_1 = arith.constant 0 : i32
    return %c0_i32, %c0_i32_0 : i32, i32
  }
  func.func @transform_2(%arg0: i32) -> (i32, i32) {
    %c0_i32 = arith.constant 0 : i32
    %c0_i32_0 = arith.constant 0 : i32
    %c0_i32_1 = arith.constant 0 : i32
    return %c0_i32, %c0_i32_0 : i32, i32
  }
  func.func @transform_3(%arg0: i32) -> (i32, i32) {
    %c0_i32 = arith.constant 0 : i32
    %c0_i32_0 = arith.constant 0 : i32
    %c0_i32_1 = arith.constant 0 : i32
    return %c0_i32, %c0_i32_0 : i32, i32
  }
  func.func @transform_4(%arg0: i32) -> (i32, i32, i32) {
    %c0_i32 = arith.constant 0 : i32
    %c0_i32_0 = arith.constant 0 : i32
    %c0_i32_1 = arith.constant 0 : i32
    %c0_i32_2 = arith.constant 0 : i32
    return %c0_i32, %c0_i32_0, %c0_i32_1 : i32, i32, i32
  }
  func.func @transform_5(%arg0: i32) -> (i32, i32, i32) {
    %c0_i32 = arith.constant 0 : i32
    %c0_i32_0 = arith.constant 0 : i32
    %c0_i32_1 = arith.constant 0 : i32
    %c0_i32_2 = arith.constant 0 : i32
    return %c0_i32, %c0_i32_0, %c0_i32_1 : i32, i32, i32
  }
  func.func @transform_6(%arg0: i32) -> (i32, i32, i32) {
    %c0_i32 = arith.constant 0 : i32
    %c0_i32_0 = arith.constant 0 : i32
    %c0_i32_1 = arith.constant 0 : i32
    return %arg0, %c0_i32, %c0_i32_0 : i32, i32, i32
  }
}

</mosaic_0001>

<bundles_post_ra>
// kernel: tpu_custom_call.1
= control target key start
LH: loop header
LB: loop body
LE: loop exit
PB: predicated region body
PF: predicated region fallthrough
CT: control target
= control target key end

     0   :  { %11 = vsyncpa [#allocation3], 0  ;;  %s2282_s0 = inlined_call_operand.hbm [shape: f32[2,16,32], index: 0, kind: input, shape index: {}]   ;;  %s2283_s1 = inlined_call_operand.vmem [shape: f32[16,16], index: 1, kind: input, shape index: {}]   ;;  %s2284_s2 = inlined_call_operand.hbm [shape: f32[32,128], index: 2, kind: input, shape index: {}]   ;;  %s2285_s3 = inlined_call_operand.vmem [shape: f32[16,2], index: 3, kind: input, shape index: {}]   ;;  %s2286_s4 = inlined_call_operand.hbm [shape: f32[2,16,128], index: 4, kind: input, shape index: {}]   ;;  %s2287_s5 = inlined_call_operand.hbm [shape: bf16[9,128,128], index: 5, kind: input, shape index: {}]   ;;  %s2288_s6 = inlined_call_operand.hbm [shape: f32[2,16,128], index: 6, kind: output, shape index: {}]  }
   0x1   :  { %13 = vsyncpa [#allocation3 + $0x1], 0 }
   0x2   :  { %14 = vsyncpa [#allocation6], 0 }
   0x3   :  { %15 = vsyncpa [#allocation9], 0 }
   0x4   :  { %16 = vsyncpa [#allocation4], 0 }
   0x5   :  { %18 = vsyncpa [#allocation4 + $0x1], 0  ;;  %s2067_s21 = smov 0   ;;  %s2069_s22 = smov 0  }
   0x6   :  { %s2071_s23 = smov 0   ;;  %s2073_s24 = smov 0  }
   0x7 LB: > { %s2088_s25 = sadd.s32 4294967295, %s2019_s24   ;;  %s1349_s26 = sadd.s32 4294967294, %s2019_s24   ;;  %s2019_s24 = sphi %s2073_s24, %s2303_s24   ;;  %s2015_s23 = sphi %s2071_s23, %s2302_s23   ;;  %s2011_s22 = sphi %s2069_s22, %s2301_s22   ;;  %s2007_s21 = sphi %s2067_s21, %s2300_s21  }
   0x8   : > { %p44_p0 = scmp.ne.s32.totalorder %s2011_s22, %s2007_s21  ;;  %p45_p1 = scmp.eq.s32.totalorder %s2088_s25, 0 }
   0x9   : > { %p173_p2 = scmp.eq.s32.totalorder %s2088_s25, 1  ;;  %p179_p3 = scmp.eq.s32.totalorder %s1349_s26, 1 }
   0xa   : > { %p2097_p4 = por %p45_p1, %p44_p0  ;;  %p1350_p5 = scmp.ge.s32.totalorder %s2019_s24, 1 }
   0xb   : > { %p2102_p6 = por %p179_p3, %p44_p0  ;;  %p186_p7 = scmp.lt.s32.totalorder %s2019_s24, 3 }
   0xc   : > { %s200_s7 = sshll.u32 %s2284_s2, 4  ;;  %s2021_s9 = smov [#allocation5]   ;;  %s201_s7 = int_to_ptr.hbm [resolvable:$true] %s200_s7 }
   0xd   : > { %p2110_p8 = pnand %p1350_p5, %p186_p7  ;;  %s202_s10 = sshll.u32 %s2021_s9, 4  ;;  %s203_s10 = int_to_ptr.vmem [resolvable:$true] %s202_s10 }
   0xe   : > { %s217_s14 = sshll.u32 %s2286_s4, 4  ;;  %s2289_s15 = smov 128   ;;  %s218_s14 = int_to_ptr.hbm [resolvable:$true] %s217_s14 }
   0xf   : > { %p1753_p9 = pneg %p2110_p8  ;;  %s2290_s16 = smov 8  }
  0x10   : > { %s2024_s17 = smov [#allocation7]   ;;  %s231_s26 = sshll.u32 %s2287_s5, 4  ;;  %s232_s26 = int_to_ptr.hbm [resolvable:$true] %s231_s26 }
  0x11   : > { %p2118_p10 = pnand %p1753_p9, %p45_p1  ;;  %s219_s18 = sshll.u32 %s2024_s17, 4  ;;  %s220_s18 = int_to_ptr.vmem [resolvable:$true] %s219_s18 }
  0x12   : > { %s2025_s29 = smov [#allocation8]   ;;  %s2027_s9 = smov 4  }
  0x13   : > { %1756 = dma.hbm_to_vmem [thread:$0]  (!%p2118_p10), %s201_s7, 512, %s203_s10, [#allocation6], %s2289_s15, %s2289_s15, %s2290_s16  }
  0x14   : > { %1759 = dma.hbm_to_vmem [thread:$0]  (!%p2118_p10), %s218_s14, 512, %s220_s18, [#allocation6], %s2289_s15, %s2289_s15, %s2290_s16  }
  0x15   : > { %s233_s30 = sshll.u32 %s2025_s29, 4  ;;  %s2026_s7 = smov 64   ;;  %s234_s30 = int_to_ptr.vmem [resolvable:$true] %s233_s30 }
  0x16   : > { %1762 = dma.hbm_to_vmem [thread:$0]  (!%p2118_p10), %s232_s26, 9216, %s234_s30, [#allocation9], %s2026_s7, %s2026_s7, %s2027_s9  }
  0x17   : > { %s2142_s10 = sadd.s32 1, %s2019_s24   ;;  %s31_s13 = sadd.s32 1, %s2015_s23 }
  0x18   : > { %s28_s12 = ssub.s32 %s2019_s24, %s2142_s10  ;;  %p38_p13 = scmp.ne.s32.totalorder %s2015_s23, %s2011_s22 }
  0x19   : > { %p29_p12 = scmp.eq.s32.totalorder %s28_s12, 0  ;;  %p39_p0 = scmp.eq.s32.totalorder %s2019_s24, 0 }
  0x1a   : > { %p2155_p3 = por %p173_p2, %p38_p13  ;;  %p1774_p5 = scmp.lt.s32.totalorder %s2019_s24, 2 }
  0x1b   : > { %s2151_s17 = scalar_select %p29_p12, %s2015_s23, %s31_s13  }
  0x1c   : > { %s247_s18 = sand.u32 1, %s2015_s23   ;;  %s1663_s19 = sshll.u32 %s2019_s24, 4 }
  0x1d   : > { %p40_p7 = por %p39_p0, %p38_p13  ;;  %s1355_s11 = sshll.u32 %s247_s18, 4 }
  0x1e   : > { %s256_s29 = scalar_lea.hbm %s2282_s0, %s1663_s19  ;;  %s251_s7 = scalar_lea.vmem [#allocation2], %s1355_s11 }
  0x1f   : > { %s257_s30 = sshll.u32 %s256_s29, 4  ;;  %s259_s9 = sshll.u32 %s251_s7, 4  ;;  %s258_s30 = int_to_ptr.hbm [resolvable:$true] %s257_s30  ;;  %s260_s9 = int_to_ptr.vmem [resolvable:$true] %s259_s9 }
  0x20   : > { %p2165_p9 = pnand %p1774_p5, %p40_p7  ;;  %s248_s13 = scalar_lea.sflag [#allocation3], %s247_s18 }
  0x21   : > { %s1915_s15 = sshra.s32 %s258_s30, 4  ;;  %s1922_s11 = scalar_lea.hbm %s2282_s0, 32  ;;  %s1916_s15 = int_to_ptr.hbm [resolvable:$true] %s1915_s15 }
  0x22   : > { %s1917_s16 = scalar_lea.hbm %s1916_s15, 16  ;;  %p1919_p10 = pneg %p2165_p9 }
  0x23   : > { %p1918_p2 = scmp.ne.s32.totalorder %s1916_s15, %s1917_s16  ;;  %p1923_p0 = scmp.lt.s32.totalorder %s1916_s15, %s2282_s0 }
  0x24   : > { %p1924_p5 = scmp.lt.s32.totalorder %s1922_s11, %s1917_s16 }
  0x25   : > { %p1920_p12 = pnand %p1919_p10, %p1918_p2 }
  0x26   : > { %p1925_p7 = por %p1924_p5, %p1923_p0 }
  0x27   : > { %p1921_p13 = pneg %p1920_p12 }
  0x29   : > { %p1926_p11 = pnand %p1925_p7, %p1921_p13 }
  0x2b   : > { %1929 = shalt.err (!%p1926_p11)
}
  0x2c   : > { %s2297_s18 = smov 8   ;;  %s2298_s7 = smov 128  }
  0x2d   : > { %1766 = dma.hbm_to_vmem [thread:$0]  (!%p2165_p9), %s258_s30, 256, %s260_s9, %s248_s13, %s2298_s7, %s2298_s7, %s2297_s18  }
  0x2e   : > { %271 = sbr.rel (%p2110_p8) target bundleno = 526 (0x20e), region = 44  ;;  %s2185_s19 = sand.u32 (!%p2110_p8), 1, %s2011_s22  }
  0x2f   : > { %s1359_s15 = sshll.u32 (!%p2110_p8), %s2185_s19, 4  ;;  %s274_s16 = scalar_lea.sflag (!%p2110_p8), [#allocation3], %s2185_s19 }
  0x30   : > { %s277_s20 = scalar_lea.vmem (!%p2110_p8), [#allocation2], %s1359_s15 }
  0x33   : > { %1990 = dma.done.wait (%p2097_p4), %s274_s16, 256  }
  0x34   : > { %1992 = vsyncadd (%p2097_p4), %s274_s16, 4294967040 }
  0x35   : > { %1994 = dma.done.wait (%p45_p1), [#allocation6], 1024  }
  0x36   : > { %1996 = vsyncadd (%p45_p1), [#allocation6], 4294966272 }
  0x37   : > { %1998 = dma.done.wait (%p45_p1), [#allocation9], 9216  }
  0x38   : > { %2000 = vsyncadd (%p45_p1), [#allocation9], 4294958080  ;;  %v326_v0 = vld [vmem:[%s277_s20 + $0x8] sm:$0xff]  ;;  %v325_v1 = vld [vmem:[%s277_s20] sm:$0xff]  ;;  %vm327_vm0 = vcmask 130048   ;;  %v2028_v9 = vmov 0  }
  0x39   : > { %348 = vmatpush.msra.mxu0 %v326_v0  ;;  %v323_v2 = vld [vmem:[%s2283_s1] sm:$0xff]  ;;  %v360_v3 = vld [vmem:[#allocation5 + $0x18] sm:$0xff]  ;;  %v359_v4 = vld [vmem:[#allocation5 + $0x10] sm:$0xff]  ;;  %1822 = vset.pattern.permute.xlu0 %v2028_v9  ;;  %vm361_vm1 = vcmask 261120   ;;  %vm419_vm2 = vcmask 1041408   ;;  %vm613_vm4 = vcmask 1046528  }
  0x3a   : > { %380 = vmatpush.msra.mxu1 %v360_v3  ;;  %v358_v5 = vld [vmem:[#allocation5 + $0x8] sm:$0xff]  ;;  %v357_v7 = vld [vmem:[#allocation5] sm:$0xff]  ;;  %v1679_v11 = vld [vmem:[#allocation8 + $0x78] sm:$0xff]  ;;  %vm458_vm5 = vsmask.f32 7424  ;;  %vm967_vm8 = vcmask 1044480  }
  0x3b   : > { %349 = vmatpush.msra.mxu0 %v325_v1  ;;  %v324_v6 = vld [vmem:[%s2283_s1 + $0x8] sm:$0xff]  ;;  %v2212_v8 = vld [vmem:[%s2285_s3] sm:$0xff]  ;;  %v1671_v12 = vld [vmem:[#allocation8 + $0x38] sm:$0xff]  ;;  %518 = vmatpush.bf16.msra.mxu2 %v1679_v11  ;;  %vm699_vm6 = vsmask.f32 6400  ;;  %vm791_vm9 = vcmask 1045504  }
  0x3c   : > { %1364 = vmatmul.msk.f32.vlgmr.msra.gmra.mxu0 %vm327_vm0, %v323_v2  ;;  %381 = vmatpush.msra.mxu1 %v359_v4  ;;  %v2218_v10 = vld [vmem:[%s2285_s3 + $0x8] sm:$0xff]  ;;  %v1678_v13 = vld [vmem:[#allocation8 + $0x70] sm:$0xff]  ;;  %v1687_v14 = vld [vmem:[#allocation8 + $0xb8] sm:$0xff]  ;;  %vm877_vm7 = vsmask.f32 5376  ;;  %vm1143_vm11 = vcmask 1043456  }
  0x3d   : > { %395 = vperm.xlu0 %1822, %v2212_v8   ;;  %580 = vmatpush.bf16.msra.mxu3 %v1671_v12  ;;  %v1670_v15 = vld [vmem:[#allocation8 + $0x30] sm:$0xff]  ;;  %v1695_v16 = vld [vmem:[#allocation8 + $0xf8] sm:$0xff]  ;;  %v1677_v19 = vld [vmem:[#allocation8 + $0x68] sm:$0xff]  ;;  %vm1053_vm10 = vsmask.f32 4352  ;;  %s1736_s29 = sshll.u32 %s2088_s25, 4 }
  0x3e   : > { %382 = vmatpush.msra.mxu1 %v358_v5  ;;  %666 = vmatpush.bf16.msrb.mxu0 %v1687_v14  ;;  %v1686_v17 = vld [vmem:[#allocation8 + $0xb0] sm:$0xff]  ;;  %v1669_v20 = vld [vmem:[#allocation8 + $0x28] sm:$0xff]  ;;  %v1676_v22 = vld [vmem:[#allocation8 + $0x60] sm:$0xff]  ;;  %s321_s18 = scalar_lea.vmem [#allocation10], %s1359_s15  ;;  %s1243_s20 = scalar_lea.hbm %s2288_s6, %s1736_s29 }
  0x3f   : > { %v1694_v18 = vld [vmem:[#allocation8 + $0xf0] sm:$0xff]  ;;  %519 = vmatpush.bf16.msra.mxu2 %v1678_v13  ;;  %v1685_v21 = vld [vmem:[#allocation8 + $0xa8] sm:$0xff]  ;;  %v1668_v23 = vld [vmem:[#allocation8 + $0x20] sm:$0xff]  ;;  %s1244_s8 = sshll.u32 %s321_s18, 4  ;;  %s1246_s30 = sshll.u32 %s1243_s20, 4  ;;  %s1245_s8 = int_to_ptr.vmem [resolvable:$true] %s1244_s8  ;;  %s1247_s30 = int_to_ptr.hbm [resolvable:$true] %s1246_s30 }
  0x40   : > { %383 = vmatpush.msra.mxu1 %v357_v7  ;;  %v1675_v24 = vld [vmem:[#allocation8 + $0x58] sm:$0xff]  ;;  %v1674_v27 = vld [vmem:[#allocation8 + $0x50] sm:$0xff]  ;;  %v1684_v29 = vld [vmem:[#allocation8 + $0xa0] sm:$0xff]  ;;  %s1232_s25 = scalar_lea.sflag [#allocation4], %s2185_s19  ;;  %s1959_s15 = sshra.s32 %s1247_s30, 4  ;;  %s1960_s15 = int_to_ptr.hbm [resolvable:$true] %s1959_s15 }
  0x41   : > { %581 = vmatpush.bf16.msra.mxu3 %v1670_v15  ;;  %v1667_v28 = vld [vmem:[#allocation8 + $0x18] sm:$0xff]  ;;  %v1693_v30 = vld [vmem:[#allocation8 + $0xe8] sm:$0xff]  ;;  %v1666_v32 = vld [vmem:[#allocation8 + $0x10] sm:$0xff]  ;;  %s1961_s27 = scalar_lea.hbm %s1960_s15, 16  ;;  %s1965_s13 = scalar_lea.hbm %s2288_s6, 32 }
  0x42   : > { %758 = vmatpush.bf16.msrb.mxu1 %v1695_v16  ;;  %667 = vmatpush.bf16.msrb.mxu0 %v1686_v17  ;;  %v1673_v31 = vld [vmem:[#allocation8 + $0x48] sm:$0xff]  ;;  %v1683_v33 = vld [vmem:[#allocation8 + $0x98] sm:$0xff]  ;;  %v1692_v34 = vld [vmem:[#allocation8 + $0xe0] sm:$0xff]  ;;  %p1962_p1 = scmp.ne.s32.totalorder %s1960_s15, %s1961_s27  ;;  %p1966_p11 = scmp.lt.s32.totalorder %s1960_s15, %s2288_s6 }
  0x43   : > { %520 = vmatpush.bf16.msra.mxu2 %v1677_v19  ;;  %v1672_v35 = vld [vmem:[#allocation8 + $0x40] sm:$0xff]  ;;  %v1665_v36 = vld [vmem:[#allocation8 + $0x8] sm:$0xff]  ;;  %v1682_v37 = vld [vmem:[#allocation8 + $0x90] sm:$0xff]  ;;  %p1967_p9 = scmp.lt.s32.totalorder %s1965_s13, %s1961_s27 }
  0x44   : > { %1365 = vmatmul.msk.f32.gmra.mxu0 %vm327_vm0, %v324_v6  ;;  %v1691_v38 = vld [vmem:[#allocation8 + $0xd8] sm:$0xff]  ;;  %v1664_v40 = vld [vmem:[#allocation8] sm:$0xff]  ;;  %v1681_v41 = vld [vmem:[#allocation8 + $0x88] sm:$0xff]  ;;  %p1963_p4 = pnand %p1962_p1, %p2155_p3 }
  0x45   : > { %400 = vperm.xlu0 %1822, %v2218_v10   ;;  %582 = vmatpush.bf16.msra.mxu3 %v1669_v20  ;;  %v1703_v39 = vld [vmem:[#allocation8 + $0x138] sm:$0xff]  ;;  %v1690_v42 = vld [vmem:[#allocation8 + $0xd0] sm:$0xff]  ;;  %v1680_v45 = vld [vmem:[#allocation8 + $0x80] sm:$0xff]  ;;  %p1968_p2 = por %p1967_p9, %p1966_p11 }
  0x46   : > { %759 = vmatpush.bf16.msrb.mxu1 %v1694_v18  ;;  %668 = vmatpush.bf16.msrb.mxu0 %v1685_v21  ;;  %v1702_v43 = vld [vmem:[#allocation8 + $0x130] sm:$0xff]  ;;  %v1711_v44 = vld [vmem:[#allocation8 + $0x178] sm:$0xff]  ;;  %v1689_v46 = vld [vmem:[#allocation8 + $0xc8] sm:$0xff]  ;;  %p1964_p8 = pneg %p1963_p4 }
  0x47   : > { %521 = vmatpush.bf16.msra.mxu2 %v1676_v22  ;;  %v1701_v47 = vld [vmem:[#allocation8 + $0x128] sm:$0xff]  ;;  %v1710_v48 = vld [vmem:[#allocation8 + $0x170] sm:$0xff]  ;;  %v1719_v49 = vld [vmem:[#allocation8 + $0x1b8] sm:$0xff] }
  0x48   : > { %v1688_v50 = vld [vmem:[#allocation8 + $0xc0] sm:$0xff]  ;;  %v1709_v52 = vld [vmem:[#allocation8 + $0x168] sm:$0xff]  ;;  %v1718_v53 = vld [vmem:[#allocation8 + $0x1b0] sm:$0xff]  ;;  %p1969_p10 = pnand %p1968_p2, %p1964_p8 }
  0x49   : > { %583 = vmatpush.bf16.msra.mxu3 %v1668_v23  ;;  %v1700_v51 = vld [vmem:[#allocation8 + $0x120] sm:$0xff]  ;;  %v1727_v54 = vld [vmem:[#allocation8 + $0x1f8] sm:$0xff]  ;;  %v1717_v57 = vld [vmem:[#allocation8 + $0x1a8] sm:$0xff] }
  0x4a   : > { %669 = vmatpush.bf16.msrb.mxu0 %v1684_v29  ;;  %760 = vmatpush.bf16.msrb.mxu1 %v1693_v30  ;;  %v1699_v55 = vld [vmem:[#allocation8 + $0x118] sm:$0xff]  ;;  %v1708_v56 = vld [vmem:[#allocation8 + $0x160] sm:$0xff]  ;;  %v1726_v58 = vld [vmem:[#allocation8 + $0x1f0] sm:$0xff] }
  0x4b   : > { %522 = vmatpush.bf16.msra.mxu2 %v1675_v24  ;;  %v1698_v59 = vld [vmem:[#allocation8 + $0x110] sm:$0xff]  ;;  %v1707_v60 = vld [vmem:[#allocation8 + $0x158] sm:$0xff]  ;;  %v1716_v61 = vld [vmem:[#allocation8 + $0x1a0] sm:$0xff] }
  0x4c   : > { %v1725_v62 = vld [vmem:[#allocation8 + $0x1e8] sm:$0xff]  ;;  %v1706_v0 = vld [vmem:[#allocation8 + $0x150] sm:$0xff]  ;;  %v1715_v1 = vld [vmem:[#allocation8 + $0x198] sm:$0xff] }
  0x4d   : > { %584 = vmatpush.bf16.msra.mxu3 %v1667_v28  ;;  %v1697_v63 = vld [vmem:[#allocation8 + $0x108] sm:$0xff]  ;;  %v1724_v2 = vld [vmem:[#allocation8 + $0x1e0] sm:$0xff]  ;;  %v1714_v6 = vld [vmem:[#allocation8 + $0x190] sm:$0xff] }
  0x4e   : > { %670 = vmatpush.bf16.msrb.mxu0 %v1683_v33  ;;  %761 = vmatpush.bf16.msrb.mxu1 %v1692_v34  ;;  %v1696_v4 = vld [vmem:[#allocation8 + $0x100] sm:$0xff]  ;;  %v1705_v5 = vld [vmem:[#allocation8 + $0x148] sm:$0xff]  ;;  %v1723_v7 = vld [vmem:[#allocation8 + $0x1d8] sm:$0xff] }
  0x4f   : > { %523 = vmatpush.bf16.msra.mxu2 %v1674_v27  ;;  %v1704_v12 = vld [vmem:[#allocation8 + $0x140] sm:$0xff]  ;;  %v1713_v13 = vld [vmem:[#allocation8 + $0x188] sm:$0xff]  ;;  %v1722_v15 = vld [vmem:[#allocation8 + $0x1d0] sm:$0xff] }
  0x50   : > { %v405_v14 = vld [vmem:[#allocation7] sm:$0xff]  ;;  %v1721_v18 = vld [vmem:[#allocation8 + $0x1c8] sm:$0xff]  ;;  %vm1432_vm3 = vmneg %vm419_vm2 }
  0x51   : > { %585 = vmatpush.bf16.msra.mxu3 %v1666_v32  ;;  %v1712_v17 = vld [vmem:[#allocation8 + $0x180] sm:$0xff]  ;;  %v406_v21 = vld [vmem:[#allocation7 + $0x8] sm:$0xff] }
  0x52   : > { %671 = vmatpush.bf16.msrb.mxu0 %v1682_v37  ;;  %762 = vmatpush.bf16.msrb.mxu1 %v1691_v38 }
  0x53   : > { %524 = vmatpush.bf16.msra.mxu2 %v1673_v31 }
  0x55   : > { %586 = vmatpush.bf16.msra.mxu3 %v1665_v36 }
  0x56   : > { %672 = vmatpush.bf16.msrb.mxu0 %v1681_v41  ;;  %763 = vmatpush.bf16.msrb.mxu1 %v1690_v42 }
  0x57   : > { %525 = vmatpush.bf16.msra.mxu2 %v1672_v35 }
  0x59   : > { %587 = vmatpush.bf16.msra.mxu3 %v1664_v40 }
  0x5a   : > { %673 = vmatpush.bf16.msrb.mxu0 %v1680_v45  ;;  %764 = vmatpush.bf16.msrb.mxu1 %v1689_v46 }
  0x5b   : > { %844 = vmatpush.bf16.msrb.mxu2 %v1703_v39 }
  0x5d   : > { %934 = vmatpush.bf16.msrb.mxu3 %v1711_v44 }
  0x5e   : > { %1020 = vmatpush.bf16.msra.mxu0 %v1719_v49  ;;  %765 = vmatpush.bf16.msrb.mxu1 %v1688_v50  ;;  %v1735_v50 = vld [vmem:[#allocation8 + $0x238] sm:$0xff] }
  0x5f   : > { %845 = vmatpush.bf16.msrb.mxu2 %v1702_v43 }
  0x61   : > { %935 = vmatpush.bf16.msrb.mxu3 %v1710_v48 }
  0x62   : > { %1021 = vmatpush.bf16.msra.mxu0 %v1718_v53 }
  0x63   : > { %846 = vmatpush.bf16.msrb.mxu2 %v1701_v47 }
  0x65   : > { %936 = vmatpush.bf16.msrb.mxu3 %v1709_v52 }
  0x66   : > { %1022 = vmatpush.bf16.msra.mxu0 %v1717_v57 }
  0x67   : > { %847 = vmatpush.bf16.msrb.mxu2 %v1700_v51 }
  0x69   : > { %937 = vmatpush.bf16.msrb.mxu3 %v1708_v56 }
  0x6a   : > { %1023 = vmatpush.bf16.msra.mxu0 %v1716_v61  ;;  %v2029_v61 = vmov 1  }
  0x6b   : > { %848 = vmatpush.bf16.msrb.mxu2 %v1699_v55  ;;  %1823 = vset.pattern.permute.xlu1 %v2029_v61 }
  0x6c   : > { %1824 = vset.pattern.permute.xlu0 %v2029_v61  ;;  %1213 = vperm.xlu1 %1823, %v2212_v8  }
  0x6d   : > { %938 = vmatpush.bf16.msrb.mxu3 %v1707_v60 }
  0x6e   : > { %1024 = vmatpush.bf16.msra.mxu0 %v1715_v1 }
  0x6f   : > { %849 = vmatpush.bf16.msrb.mxu2 %v1698_v59 }
  0x71   : > { %939 = vmatpush.bf16.msrb.mxu3 %v1706_v0 }
  0x72   : > { %1025 = vmatpush.bf16.msra.mxu0 %v1714_v6  ;;  %v1732_v6 = vld [vmem:[#allocation8 + $0x220] sm:$0xff] }
  0x73   : > { %850 = vmatpush.bf16.msrb.mxu2 %v1697_v63 }
  0x74   : > { %1217 = vperm.xlu1 %1823, %v2218_v10  }
  0x75   : > { %940 = vmatpush.bf16.msrb.mxu3 %v1705_v5 }
  0x76   : > { %1026 = vmatpush.bf16.msra.mxu0 %v1713_v13 }
  0x77   : > { %851 = vmatpush.bf16.msrb.mxu2 %v1696_v4 }
  0x79   : > { %941 = vmatpush.bf16.msrb.mxu3 %v1704_v12 }
  0x7a   : > { %1027 = vmatpush.bf16.msra.mxu0 %v1712_v17  ;;  %v1730_v17 = vld [vmem:[#allocation8 + $0x210] sm:$0xff] }
  0xaf   : > { %v396_v3 = vpop.permute.xlu0 %395 }
  0xb7   : > { %v401_v19 = vpop.permute.xlu0 %400 }
  0xb9   : > { %v351_v25 = vpop.f32.mrf.mxu0 }
  0xba   : > { %1366 = vmatmul.msk.f32.vlgmr.msra.gmra.mxu1 %vm361_vm1, %v351_v25  ;;  %v1720_v25 = vld [vmem:[#allocation8 + $0x1c0] sm:$0xff] }
  0xbb   : > { %1110 = vmatpush.bf16.msra.mxu1 %v1727_v54 }
  0xbf   : > { %1111 = vmatpush.bf16.msra.mxu1 %v1726_v58  ;;  %v1734_v58 = vld [vmem:[#allocation8 + $0x230] sm:$0xff] }
  0xc1   : > { %v354_v26 = vpop.f32.mrf.mxu0 }
  0xc2   : > { %1367 = vmatmul.msk.f32.gmra.mxu1 %vm361_vm1, %v354_v26 }
  0xc3   : > { %1112 = vmatpush.bf16.msra.mxu1 %v1725_v62  ;;  %v1733_v62 = vld [vmem:[#allocation8 + $0x228] sm:$0xff] }
  0xc7   : > { %1113 = vmatpush.bf16.msra.mxu1 %v1724_v2 }
  0xcb   : > { %1114 = vmatpush.bf16.msra.mxu1 %v1723_v7 }
  0xcf   : > { %1115 = vmatpush.bf16.msra.mxu1 %v1722_v15 }
  0xd3   : > { %1116 = vmatpush.bf16.msra.mxu1 %v1721_v18  ;;  %v1729_v18 = vld [vmem:[#allocation8 + $0x208] sm:$0xff] }
  0xd7   : > { %1117 = vmatpush.bf16.msra.mxu1 %v1720_v25 }
 0x137   : > { %v2221_v9 = vpop.f32.mrf.mxu1 }
 0x138   : > { %v403_v11 = vmul.f32 %v396_v3, %v2221_v9 }
 0x13a   : > { %v407_v16 = vadd.f32 %v405_v14, %v403_v11  ;;  %v1731_v14 = vld [vmem:[#allocation8 + $0x218] sm:$0xff] }
 0x13c   : > { %v409_v22 = vmax.f32 %v407_v16, 0.0 }
 0x13e   : > { %v411_v26 = vpack.c.bf16 %v409_v22, %v409_v22 }
 0x13f   : > { %v2224_v20 = vpop.f32.mrf.mxu1 }
 0x140   : > { %v404_v23 = vmul.f32 %v401_v19, %v2224_v20  ;;  %v415_v29 = vunpack.c.l.b16 %v411_v26  ;;  %v1728_v19 = vld [vmem:[#allocation8 + $0x200] sm:$0xff] }
 0x142   : > { %v408_v24 = vadd.f32 %v406_v21, %v404_v23 }
 0x144   : > { %v410_v27 = vmax.f32 %v408_v24, 0.0 }
 0x146   : > { %v412_v28 = vpack.c.bf16 %v410_v27, %v410_v27 }
 0x148   : > { %v416_v30 = vunpack.c.l.b16 %v412_v28 }
 0x14a   : > { %v417_v31 = vpack.c.b16 %v416_v30, %v415_v29 }
 0x14c   : > { %v418_v32 = vrot.slane %v417_v31, 6 }
 0x14e   : > { %v2227_v33 = vsel %vm419_vm2, 0, %v418_v32  ;;  %v2229_v34 = vsel %vm419_vm2, %v418_v32, 0  ;;  %1433 = vmatmul.msk.bf16.vlgmr.msra.gmra.mxu3 %vm1432_vm3, %v418_v32 }
 0x14f   : > { %v614_v35 = vrot.slane %v2227_v33, 1  ;;  %v615_v36 = vrot.slane %v2229_v34, 1  ;;  %v459_v37 = vshrl.u32 %v2227_v33, 16  ;;  %v461_v38 = vshll.u32 %v2227_v33, 16 }
 0x150   : > { %v465_v39 = vshll.u32 %v2229_v34, 16  ;;  %v703_v40 = vshrl.u32 %v2229_v34, 16  ;;  %v968_v0 = vrot.slane %v2227_v33, 3  ;;  %v969_v1 = vrot.slane %v2229_v34, 3 }
 0x151   : > { %v616_v41 = vsel %vm613_vm4, %v614_v35, %v615_v36  ;;  %v463_v42 = vrot.slane %v461_v38, 1  ;;  %v700_v43 = vrot.slane %v459_v37, 1  ;;  %v701_v44 = vrot.slane %v461_v38, 2 }
 0x152   : > { %674 = vmatmul.bf16.vlgmr.msrb.gmra.mxu0 %v616_v41  ;;  %v705_v45 = vrot.slane %v703_v40, 1  ;;  %v706_v46 = vrot.slane %v465_v39, 2  ;;  %v467_v48 = vrot.slane %v465_v39, 1  ;;  %v878_v52 = vrot.slane %v459_v37, 2 }
 0x153   : > { %v464_v47 = vor.u32 %v463_v42, %v459_v37  ;;  %v702_v49 = vor.u32 %v701_v44, %v700_v43  ;;  %v879_v54 = vrot.slane %v461_v38, 3  ;;  %v881_v55 = vrot.slane %v703_v40, 2 }
 0x154   : > { %v707_v51 = vor.u32 %v706_v46, %v705_v45  ;;  %v882_v56 = vrot.slane %v465_v39, 3  ;;  %v1054_v2 = vrot.slane %v459_v37, 3  ;;  %v1055_v3 = vrot.slane %v461_v38, 4 }
 0x155   : > { %v468_v53 = vsel %vm458_vm5, %v464_v47, %v467_v48  ;;  %v880_v59 = vor.u32 %v879_v54, %v878_v52  ;;  %v1057_v4 = vrot.slane %v703_v40, 3  ;;  %v1058_v5 = vrot.slane %v465_v39, 4 }
 0x156   : > { %526 = vmatmul.bf16.vlgmr.msra.gmra.mxu2 %v468_v53  ;;  %v708_v57 = vsel %vm699_vm6, %v702_v49, %v707_v51  ;;  %v883_v60 = vor.u32 %v882_v56, %v881_v55  ;;  %v970_v7 = vsel %vm967_vm8, %v968_v0, %v969_v1  ;;  %v792_v11 = vrot.slane %v2227_v33, 2  ;;  %v1214_v49 = vpop.permute.xlu1 %1213  ;;  %v1223_v53 = vld [vmem:[#allocation7 + $0x10] sm:$0xff] }
 0x157   : > { %766 = vmatmul.bf16.vlgmr.msrb.gmra.mxu1 %v708_v57  ;;  %1196 = vmatpush.bf16.msra.mxu2 %v1735_v50  ;;  %v793_v8 = vrot.slane %v2229_v34, 2  ;;  %v1056_v12 = vor.u32 %v1055_v3, %v1054_v2  ;;  %v1059_v13 = vor.u32 %v1058_v5, %v1057_v4  ;;  %v1144_v21 = vrot.slane %v2227_v33, 4 }
 0x158   : > { %v884_v63 = vsel %vm877_vm7, %v880_v59, %v883_v60  ;;  %v1145_v22 = vrot.slane %v2229_v34, 4 }
 0x159   : > { %v794_v15 = vsel %vm791_vm9, %v792_v11, %v793_v8  ;;  %v1060_v16 = vsel %vm1053_vm10, %v1056_v12, %v1059_v13 }
 0x15a   : > { %v1146_v10 = vsel %vm1143_vm11, %v1144_v21, %v1145_v22 }
 0x15b   : > { %1197 = vmatpush.bf16.msra.mxu2 %v1734_v58 }
 0x15e   : > { %942 = vmatmul.bf16.vlgmr.msrb.gmra.mxu3 %v884_v63  ;;  %v1224_v63 = vld [vmem:[#allocation7 + $0x18] sm:$0xff] }
 0x15f   : > { %1198 = vmatpush.bf16.msra.mxu2 %v1733_v62  ;;  %v1218_v62 = vpop.permute.xlu1 %1217 }
 0x162   : > { %1028 = vmatmul.bf16.vlgmr.msra.gmra.mxu0 %v970_v7 }
 0x163   : > { %1199 = vmatpush.bf16.msra.mxu2 %v1732_v6 }
 0x166   : > { %852 = vmatmul.bf16.vlgmr.msrb.gmra.mxu2 %v794_v15 }
 0x167   : > { %1118 = vmatmul.bf16.vlgmr.msra.gmra.mxu1 %v1060_v16  ;;  %1200 = vmatpush.bf16.msra.mxu2 %v1731_v14 }
 0x16b   : > { %1201 = vmatpush.bf16.msra.mxu2 %v1730_v17 }
 0x16f   : > { %1202 = vmatpush.bf16.msra.mxu2 %v1729_v18 }
 0x173   : > { %1203 = vmatpush.bf16.msra.mxu2 %v1728_v19 }
 0x176   : > { %1204 = vmatmul.bf16.vlgmr.msra.gmra.mxu2 %v1146_v10 }
 0x1cf   : > { %v675_v25 = vpop.f32.mrf.mxu0 }
 0x1d1   : > { %v589_v23 = vpop.f32.mrf.mxu3 }
 0x1d4   : > { %v767_v26 = vpop.f32.mrf.mxu1 }
 0x1d7   : > { %v677_v31 = vpop.f32.mrf.mxu0 }
 0x1d9   : > { %v527_v24 = vpop.f32.mrf.mxu2  ;;  %v591_v29 = vpop.f32.mrf.mxu3 }
 0x1da   : > { %v590_v28 = vadd.f32 %v589_v23, %v527_v24 }
 0x1dc   : > { %v680_v30 = vadd.f32 %v675_v25, %v590_v28  ;;  %v769_v37 = vpop.f32.mrf.mxu1 }
 0x1de   : > { %v772_v36 = vadd.f32 %v767_v26, %v680_v30 }
 0x1df   : > { %v1029_v40 = vpop.f32.mrf.mxu0 }
 0x1e1   : > { %v529_v27 = vpop.f32.mrf.mxu2  ;;  %v943_v38 = vpop.f32.mrf.mxu3 }
 0x1e2   : > { %v592_v35 = vadd.f32 %v591_v29, %v529_v27 }
 0x1e4   : > { %v681_v34 = vadd.f32 %v677_v31, %v592_v35  ;;  %v1119_v45 = vpop.f32.mrf.mxu1 }
 0x1e6   : > { %v773_v42 = vadd.f32 %v769_v37, %v681_v34 }
 0x1e7   : > { %v1031_v52 = vpop.f32.mrf.mxu0 }
 0x1e9   : > { %v853_v32 = vpop.f32.mrf.mxu2  ;;  %v945_v46 = vpop.f32.mrf.mxu3 }
 0x1ea   : > { %v858_v33 = vadd.f32 %v853_v32, %v772_v36 }
 0x1ec   : > { %v948_v39 = vadd.f32 %v943_v38, %v858_v33  ;;  %v1121_v57 = vpop.f32.mrf.mxu1 }
 0x1ee   : > { %v1034_v44 = vadd.f32 %v1029_v40, %v948_v39 }
 0x1f0   : > { %v1124_v48 = vadd.f32 %v1119_v45, %v1034_v44 }
 0x1f1   : > { %v855_v41 = vpop.f32.mrf.mxu2 }
 0x1f2   : > { %v859_v43 = vadd.f32 %v855_v41, %v773_v42 }
 0x1f4   : > { %v949_v47 = vadd.f32 %v945_v46, %v859_v43 }
 0x1f6   : > { %v1035_v55 = vadd.f32 %v1031_v52, %v949_v47 }
 0x1f8   : > { %v1125_v59 = vadd.f32 %v1121_v57, %v1035_v55 }
 0x1f9   : > { %v1205_v50 = vpop.f32.mrf.mxu2 }
 0x1fa   : > { %v1210_v51 = vadd.f32 %v1205_v50, %v1124_v48 }
 0x1fc   : > { %v1220_v54 = vmul.f32 %v1214_v49, %v1210_v51 }
 0x1fe   : > { %v1225_v56 = vadd.f32 %v1223_v53, %v1220_v54 }
 0x200   : > { %v1227_v58 = vadd.f32 %v1225_v56, %v2221_v9 }
 0x201   : > { %v1207_v60 = vpop.f32.mrf.mxu2 }
 0x202   : > { %1229 = vst [vmem:[%s321_s18] sm:$0xff] %v1227_v58  ;;  %v1211_v61 = vadd.f32 %v1207_v60, %v1125_v59 }
 0x204   : > { %v1221_v0 = vmul.f32 %v1218_v62, %v1211_v61 }
 0x206   : > { %v1226_v1 = vadd.f32 %v1224_v63, %v1221_v0 }
 0x208   : > { %v1228_v9 = vadd.f32 %v1226_v1, %v2224_v20 }
 0x20a   : > { %1230 = vst [vmem:[%s321_s18 + $0x8] sm:$0xff] %v1228_v9 }
 0x20b   : > { %1972 = shalt.err (!%p1969_p10)
}
 0x20c   : > { %s2030_s19 = smov 128   ;;  %s2031_s29 = smov 8  }
 0x20d   : > { %1751 = dma.vmem_to_hbm [thread:$0]  (%p2155_p3), %s1245_s8, 256, %s1247_s30, %s1232_s25, %s2030_s19, %s2030_s19, %s2031_s29  }
 0x20e PF: > { %s1261_s18 = sand.u32 1, %s2007_s21   ;;  %p2299_p12 = scmp.ge.s32.totalorder %s2019_s24, 2 }
 0x20f   : > { %s1262_s7 = scalar_lea.sflag [#allocation4], %s1261_s18 }
 0x210   : > { %p1768_p13 = pnand %p2299_p12, %p2102_p6 }
 0x212   : > { %p1769_p0 = pneg %p1768_p13 }
 0x214   : > { %2002 = dma.done.wait (%p1769_p0), %s1262_s7, 256  }
 0x215   : > { %2004 = vsyncadd (%p1769_p0), %s1262_s7, 4294967040  ;;  %p21_p5 = scmp.ge.s32.totalorder %s2142_s10, 4   ;;  %s2300_s21 = smov %s2011_s22 }
 0x216   : > { %s2301_s22 = smov %s2015_s23  ;;  %s2302_s23 = smov %s2151_s17 }
 0x217   : > { %s2303_s24 = smov %s2142_s10  ;;  %23 = sbr.rel (!%p21_p5) target bundleno = 7 (0x7), region = 110 }
 0x21c   :  { %1268 = vsyncpa [#allocation3], 1 }
 0x21d   :  { %1270 = vsyncpa [#allocation3 + $0x1], 1 }
 0x21e   :  { %1271 = vsyncpa [#allocation6], 1 }
 0x21f   :  { %1272 = vsyncpa [#allocation9], 1 }
 0x220   :  { %1273 = vsyncpa [#allocation4], 1 }
 0x221   :  { %1275 = vsyncpa [#allocation4 + $0x1], 1 }

</bundles_post_ra>
